<compile_context>
chip_gen: v7x
topology: tpu7x:2x2x1
jax: 0.10.0
libtpu: 0.0.40
codegen_flags: <defaults>
</compile_context>

<pallas_src>
import jax
import jax.numpy as jnp
from jax import lax
from jax.experimental import pallas as pl
from jax.experimental.pallas import tpu as pltpu


# --------------------------------------------------------------------------- #
# Kernel 1: tanh embedding + multi-granular conv + max-pool ("phrase")
# --------------------------------------------------------------------------- #
def phrase_kernel(emb_ref,      # (B, L, Dw) f32 raw word embeddings
                  wcat_ref,     # (Dw, 6M)  bf16  [Wu | Wb0 | Wb1 | Wt0 | Wt1 | Wt2]
                  bu_ref, bb_ref, bt_ref,   # (1, M) f32 each
                  words_ref,    # out: (B, L, Dw) f32 tanh(embeddings)
                  phrase_ref):  # out: (B, L, M)  f32 max over the 3 granularities
    Bq, L, Dw = emb_ref.shape
    M = bu_ref.shape[1]

    x = jnp.tanh(emb_ref[...])                    # fused tanh embedding
    words_ref[...] = x

    # One MXU-friendly GEMM for all six convolution taps.
    y = jnp.dot(x.reshape(Bq * L, Dw).astype(wcat_ref.dtype), wcat_ref[...],
                preferred_element_type=jnp.float32).reshape(Bq, L, 6 * M)

    def down(v, k):   # out[t] = v[t - k], zeros at the start (left padding taps)
        return jnp.concatenate(
            [jnp.zeros((Bq, k, M), v.dtype), v[:, :L - k, :]], axis=1)

    def up(v, k):     # out[t] = v[t + k], zeros at the end (right padding taps)
        return jnp.concatenate(
            [v[:, k:, :], jnp.zeros((Bq, k, M), v.dtype)], axis=1)

    # unigram: W @ x[t]
    uni = y[:, :, 0 * M:1 * M] + bu_ref[...]
    # bigram  (kernel 2, pad 1, dilation 2): W0 @ x[t-1] + W1 @ x[t+1]
    big = down(y[:, :, 1 * M:2 * M], 1) + up(y[:, :, 2 * M:3 * M], 1) + bb_ref[...]
    # trigram (kernel 3, pad 2, dilation 2): W0 @ x[t-2] + W1 @ x[t] + W2 @ x[t+2]
    tri = (down(y[:, :, 3 * M:4 * M], 2) + y[:, :, 4 * M:5 * M]
           + up(y[:, :, 5 * M:6 * M], 2) + bt_ref[...])

    phrase_ref[...] = jnp.maximum(jnp.maximum(uni, big), tri)   # MaxPool2d((3,1))


# --------------------------------------------------------------------------- #
# Kernel 2: fused bidirectional LSTM with packed (variable-length) semantics
# --------------------------------------------------------------------------- #
def bilstm_kernel(len_ref,      # (TB, 1) int32 valid lengths
                  x_ref,        # (T, TB, D) bf16, time-major input
                  wih_ref,      # (D, 8H) bf16  fused input weights (gate-major, dir-minor)
                  whh_ref,      # (2H, 8H) bf16 block-diagonal recurrent weights
                  b_ref,        # (1, 8H) f32  fused bias (b_ih + b_hh)
                  outf_ref,     # out: (T, TB, H) f32 forward outputs (zero past seq_len)
                  outb_ref,     # out: (T, TB, H) f32 backward outputs (zero past seq_len)
                  hn_ref,       # out: (TB, 2H) f32 final hidden [h_fwd | h_bwd]
                  g_ref):       # scratch: (T, TB, 8H) f32 hoisted input projections
    T, Bt, D = x_ref.shape
    H2 = whh_ref.shape[0]          # 2H
    H = H2 // 2
    G8 = wih_ref.shape[1]          # 8H

    # ---- hoisted input projection: ONE big GEMM for all timesteps ---------- #
    x_all = x_ref[...].reshape(T * Bt, D)
    g_all = jnp.dot(x_all, wih_ref[...], preferred_element_type=jnp.float32)
    g_ref[...] = (g_all + b_ref[...]).reshape(T, Bt, G8)

    lens = len_ref[...]                                        # (Bt, 1) int32
    whh = whh_ref[...]                                         # keep resident

    # Loop-invariant lane masks (hoisted; avoids per-step broadcasts).
    lane8 = lax.broadcasted_iota(jnp.int32, (Bt, G8), 1)
    sel_fwd = (lane8 // H) % 2 == 0            # forward-direction columns
    is_g = (lane8 >= 4 * H) & (lane8 < 6 * H)  # "g" (cell-candidate) columns
    lane2 = lax.broadcasted_iota(jnp.int32, (Bt, H2), 1)
    is_fwd_half = lane2 < H                    # first H columns of the fused state

    def step(s, carry):
        hcat, ccat = carry                     # (Bt, 2H) f32 each, [fwd | bwd]
        tb = T - 1 - s                         # backward direction timestep

        # Fused recurrent projection for both directions (block-diagonal W_hh).
        hh = jnp.dot(hcat.astype(whh.dtype), whh,
                     preferred_element_type=jnp.float32)
        # Forward gate columns come from time s, backward from time T-1-s.
        gates = jnp.where(sel_fwd, g_ref[s], g_ref[tb]) + hh

        # Full-width EUP activations + one select (no narrow lane slices).
        act = jnp.where(is_g, jnp.tanh(gates), jax.nn.sigmoid(gates))
        i_cat = act[:, 0 * H2:1 * H2]
        f_cat = act[:, 1 * H2:2 * H2]
        g_cat = act[:, 2 * H2:3 * H2]
        o_cat = act[:, 3 * H2:4 * H2]

        ccat_new = f_cat * ccat + i_cat * g_cat
        hcat_new = o_cat * jnp.tanh(ccat_new)

        # Packed-sequence semantics: freeze state past each sequence length.
        mf = s < lens                          # forward-step validity  (Bt, 1)
        mb = tb < lens                         # backward-step validity (Bt, 1)
        mcat = jnp.where(is_fwd_half, mf, mb)  # (Bt, 2H)
        hcat_new = jnp.where(mcat, hcat_new, hcat)
        ccat_new = jnp.where(mcat, ccat_new, ccat)

        # Padded outputs (zeros past seq_len), contiguous leading-index stores.
        outf_ref[s] = jnp.where(mf, hcat_new[:, :H], 0.0)
        outb_ref[tb] = jnp.where(mb, hcat_new[:, H:], 0.0)
        return hcat_new, ccat_new

    h0 = jnp.zeros((Bt, H2), jnp.float32)
    c0 = jnp.zeros((Bt, H2), jnp.float32)
    hcat_final, _ = lax.fori_loop(0, T, step, (h0, c0), unroll=True)
    hn_ref[...] = hcat_final                   # == cat([h_n_fwd, h_n_bwd], -1)


# --------------------------------------------------------------------------- #
# Wrappers
# --------------------------------------------------------------------------- #
def _fuse_bilstm_params(p, H):
    """Build the fused layouts used by bilstm_kernel.

    Column order of the 8H axis (blocks of width H):
      [i_f, i_b, f_f, f_b, g_f, g_b, o_f, o_b]  (PyTorch gate order i,f,g,o).
    W_hh is block-diagonal over the [h_fwd | h_bwd] fused state.
    """
    cols_ih, cols_hh, cols_b = [], [], []
    zhh = jnp.zeros((H, H), jnp.float32)
    for g in range(4):
        sl = slice(g * H, (g + 1) * H)
        cols_ih += [p["wih_f"][sl].T, p["wih_b"][sl].T]
        cols_hh += [jnp.concatenate([p["whh_f"][sl].T, zhh], axis=0),
                    jnp.concatenate([zhh, p["whh_b"][sl].T], axis=0)]
        cols_b += [p["bih_f"][sl] + p["bhh_f"][sl],
                   p["bih_b"][sl] + p["bhh_b"][sl]]
    wih = jnp.concatenate(cols_ih, axis=1).astype(jnp.bfloat16)     # (D, 8H)
    whh = jnp.concatenate(cols_hh, axis=1).astype(jnp.bfloat16)     # (2H, 8H)
    bias = jnp.concatenate(cols_b).reshape(1, 8 * H).astype(jnp.float32)
    return wih, whh, bias


def run_phrase(emb, params, M):
    """tanh(embeddings) + n-gram convs + max-pool -> (words, phrase)."""
    B, L, Dw = emb.shape
    wcat = jnp.concatenate(
        [params["wu"][:, :, 0].T,
         params["wb"][:, :, 0].T, params["wb"][:, :, 1].T,
         params["wt"][:, :, 0].T, params["wt"][:, :, 1].T, params["wt"][:, :, 2].T],
        axis=1).astype(jnp.bfloat16)                                 # (Dw, 6M)
    bu = params["bu"].reshape(1, M).astype(jnp.float32)
    bb = params["bb"].reshape(1, M).astype(jnp.float32)
    bt = params["bt"].reshape(1, M).astype(jnp.float32)

    words, phrase = pl.pallas_call(
        phrase_kernel,
        out_shape=(jax.ShapeDtypeStruct((B, L, Dw), jnp.float32),
                   jax.ShapeDtypeStruct((B, L, M), jnp.float32)),
        in_specs=[pl.BlockSpec(memory_space=pltpu.MemorySpace.VMEM)] * 5,
        out_specs=(pl.BlockSpec(memory_space=pltpu.MemorySpace.VMEM),) * 2,
        compiler_params=pltpu.CompilerParams(vmem_limit_bytes=48 * 1024 * 1024),
    )(emb.astype(jnp.float32), wcat, bu, bb, bt)
    return words, phrase


def run_bilstm(x_btd, lengths, p, H):
    """Bidirectional LSTM. Returns (padded sequence output (B,T,2H), final hidden (B,2H))."""
    B, T, D = x_btd.shape
    wih, whh, bias = _fuse_bilstm_params(p, H)

    # Time-major bf16 view for the kernel.  (At these sizes the transpose is
    # negligible; at production scale fold it into the producer.)
    x_tm = jnp.transpose(x_btd, (1, 0, 2)).astype(jnp.bfloat16)      # (T, B, D)
    lens = lengths.astype(jnp.int32).reshape(B, 1)

    # Batch tile: whole batch when small, otherwise VMEM-bounded tiles
    # (multiples of 8; conservative enough for v7x's 64 MiB VMEM).
    TB = B
    for cand in (512, 256, 128):
        if B > cand and B % cand == 0:
            TB = cand
            break
    grid = (pl.cdiv(B, TB),)

    seq_f, seq_b, hn = pl.pallas_call(
        bilstm_kernel,
        out_shape=(jax.ShapeDtypeStruct((T, B, H), jnp.float32),
                   jax.ShapeDtypeStruct((T, B, H), jnp.float32),
                   jax.ShapeDtypeStruct((B, 2 * H), jnp.float32)),
        grid=grid,
        in_specs=[
            pl.BlockSpec((TB, 1), lambda b: (b, 0)),                 # lengths
            pl.BlockSpec((T, TB, D), lambda b: (0, b, 0)),           # x (time-major)
            pl.BlockSpec((D, 8 * H), lambda b: (0, 0)),              # fused W_ih
            pl.BlockSpec((2 * H, 8 * H), lambda b: (0, 0)),          # block-diag W_hh
            pl.BlockSpec((1, 8 * H), lambda b: (0, 0)),              # fused bias
        ],
        out_specs=(
            pl.BlockSpec((T, TB, H), lambda b: (0, b, 0)),
            pl.BlockSpec((T, TB, H), lambda b: (0, b, 0)),
            pl.BlockSpec((TB, 2 * H), lambda b: (b, 0)),
        ),
        scratch_shapes=[pltpu.VMEM((T, TB, 8 * H), jnp.float32)],
        compiler_params=pltpu.CompilerParams(
            dimension_semantics=("parallel",),
            vmem_limit_bytes=48 * 1024 * 1024),
    )(lens, x_tm, wih, whh, bias)

    seq = jnp.transpose(jnp.concatenate([seq_f, seq_b], axis=-1), (1, 0, 2))
    return seq, hn


def multigranular_forward(questions, question_len, params, *, module_dim, rnn_dim):
    """Mirrors MultiGranularInputUnitLinguistic.forward (self_attn=False, eval mode)."""
    B, L = questions.shape
    M = module_dim
    H_enc = rnn_dim // 2                                  # bidirectional halves rnn_dim

    emb = jnp.take(params["embed"], questions, axis=0)    # (B, L, Dw) gather in JAX
    words, phrase = run_phrase(emb, params, M)

    # Sentence encoder: plain bi-LSTM over the full padded sequence (no packing).
    full_len = jnp.full((B,), L, jnp.int32)
    sentence, _ = run_bilstm(phrase, full_len, params["enc"], H_enc)

    concate = jnp.concatenate([words, phrase, sentence], axis=-1)   # (B, L, 2M + Dw)

    # concatRNN (DynamicRNN): packed bi-LSTM -> padded output + final hidden.
    q_seq, q_state = run_bilstm(concate, question_len, params["crnn"], M)

    # (output_embedding, words, question_embedding); dropouts are identity (eval).
    return q_state, words, q_seq


# --------------------------------------------------------------------------- #
# Pure-JAX reference (mirrors the PyTorch semantics, same bf16-matmul policy)
# --------------------------------------------------------------------------- #
def _mm_bf16(a, b):
    return jnp.dot(a.astype(jnp.bfloat16), b.astype(jnp.bfloat16),
                   preferred_element_type=jnp.float32)


def _ref_phrase(emb, params, M):
    B, L, Dw = emb.shape
    x = jnp.tanh(emb)
    x2 = x.reshape(B * L, Dw)

    def proj(w_tap):
        return _mm_bf16(x2, w_tap.T).reshape(B, L, M)

    def down(v, k):
        return jnp.pad(v, ((0, 0), (k, 0), (0, 0)))[:, :L, :]

    def up(v, k):
        return jnp.pad(v, ((0, 0), (0, k), (0, 0)))[:, k:, :]

    uni = proj(params["wu"][:, :, 0]) + params["bu"]
    big = down(proj(params["wb"][:, :, 0]), 1) + up(proj(params["wb"][:, :, 1]), 1) + params["bb"]
    tri = (down(proj(params["wt"][:, :, 0]), 2) + proj(params["wt"][:, :, 1])
           + up(proj(params["wt"][:, :, 2]), 2) + params["bt"])
    return x, jnp.maximum(jnp.maximum(uni, big), tri)


def _ref_bilstm(x, lens, p, H):
    B, T, D = x.shape

    def run(reverse):
        sfx = "_b" if reverse else "_f"
        wih, whh = p["wih" + sfx], p["whh" + sfx]
        bias = p["bih" + sfx] + p["bhh" + sfx]
        h = jnp.zeros((B, H), jnp.float32)
        c = jnp.zeros((B, H), jnp.float32)
        outs = [None] * T
        order = range(T - 1, -1, -1) if reverse else range(T)
        for t in order:
            g = _mm_bf16(x[:, t, :], wih.T) + _mm_bf16(h, whh.T) + bias
            i = jax.nn.sigmoid(g[:, 0 * H:1 * H])
            f = jax.nn.sigmoid(g[:, 1 * H:2 * H])
            gg = jnp.tanh(g[:, 2 * H:3 * H])
            o = jax.nn.sigmoid(g[:, 3 * H:4 * H])
            c_new = f * c + i * gg
            h_new = o * jnp.tanh(c_new)
            m = (t < lens)[:, None]
            h = jnp.where(m, h_new, h)
            c = jnp.where(m, c_new, c)
            outs[t] = jnp.where(m, h, 0.0)
        return jnp.stack(outs, axis=1), h

    of, hf = run(False)
    ob, hb = run(True)
    return jnp.concatenate([of, ob], -1), jnp.concatenate([hf, hb], -1)


def reference_forward(questions, question_len, params, *, module_dim, rnn_dim):
    B, L = questions.shape
    emb = jnp.take(params["embed"], questions, axis=0)
    words, phrase = _ref_phrase(emb, params, module_dim)
    sentence, _ = _ref_bilstm(phrase, jnp.full((B,), L, jnp.int32),
                              params["enc"], rnn_dim // 2)
    concate = jnp.concatenate([words, phrase, sentence], axis=-1)
    q_seq, q_state = _ref_bilstm(concate, question_len.astype(jnp.int32),
                                 params["crnn"], module_dim)
    return q_state, words, q_seq


# --------------------------------------------------------------------------- #
# Deterministic synthetic parameters (PyTorch-style inits)
# --------------------------------------------------------------------------- #
def init_lstm_params(key, D, H):
    bound = 1.0 / (H ** 0.5)
    ks = jax.random.split(key, 8)
    u = lambda k, s: jax.random.uniform(k, s, jnp.float32, -bound, bound)
    return {"wih_f": u(ks[0], (4 * H, D)), "whh_f": u(ks[1], (4 * H, H)),
            "bih_f": u(ks[2], (4 * H,)), "bhh_f": u(ks[3], (4 * H,)),
            "wih_b": u(ks[4], (4 * H, D)), "whh_b": u(ks[5], (4 * H, H)),
            "bih_b": u(ks[6], (4 * H,)), "bhh_b": u(ks[7], (4 * H,))}


def init_params(key, vocab, Dw, M, rnn_dim):
    ks = jax.random.split(key, 9)

    def cu(k, shape, fan_in):
        b = 1.0 / (fan_in ** 0.5)
        return jax.random.uniform(k, shape, jnp.float32, -b, b)

    return {
        "embed": jax.random.normal(ks[0], (vocab, Dw), jnp.float32),
        "wu": cu(ks[1], (M, Dw, 1), Dw), "bu": cu(ks[2], (M,), Dw),
        "wb": cu(ks[3], (M, Dw, 2), 2 * Dw), "bb": cu(ks[4], (M,), 2 * Dw),
        "wt": cu(ks[5], (M, Dw, 3), 3 * Dw), "bt": cu(ks[6], (M,), 3 * Dw),
        "enc": init_lstm_params(ks[7], M, rnn_dim // 2),
        "crnn": init_lstm_params(ks[8], 2 * M + Dw, M),
    }


# --------------------------------------------------------------------------- #
if __name__ == "__main__":
    # Small shapes consistent with the module's forward signature.
    vocab_size = 50
    wordvec_dim = 32        # word embedding dim
    module_dim = 64         # conv channels / concatRNN hidden (per direction)
    rnn_dim = 64            # encoder hidden = rnn_dim // 2 = 32 per direction
    bs, max_len = 2, 8

    key = jax.random.PRNGKey(0)
    k_p, k_q = jax.random.split(key)
    params = init_params(k_p, vocab_size, wordvec_dim, module_dim, rnn_dim)
    questions = jax.random.randint(k_q, (bs, max_len), 0, vocab_size, dtype=jnp.int32)
    question_len = jnp.array([max_len, 5], dtype=jnp.int32)   # exercises the masking

    out_emb, words, q_emb = multigranular_forward(
        questions, question_len, params, module_dim=module_dim, rnn_dim=rnn_dim)
    out_emb, words, q_emb = map(jax.block_until_ready, (out_emb, words, q_emb))

    assert out_emb.shape == (bs, 2 * module_dim), out_emb.shape
    assert words.shape == (bs, max_len, wordvec_dim), words.shape
    assert q_emb.shape == (bs, max_len, 2 * module_dim), q_emb.shape

    r_out, r_words, r_qemb = reference_forward(
        questions, question_len, params, module_dim=module_dim, rnn_dim=rnn_dim)
    r_out, r_words, r_qemb = map(jax.block_until_ready, (r_out, r_words, r_qemb))

    # Tolerance accounts for bf16 matmul operands / Mosaic-vs-XLA transcendentals.
    assert jnp.allclose(words, r_words, rtol=1e-2, atol=1e-2), "words mismatch"
    assert jnp.allclose(out_emb, r_out, rtol=1e-2, atol=1e-2), "output_embedding mismatch"
    assert jnp.allclose(q_emb, r_qemb, rtol=1e-2, atol=1e-2), "question_embedding mismatch"

    print("KERNEL_OK")
</pallas_src>

<mosaic_0001>
module attributes {stable_mosaic.version = 11 : i64} {
  func.func @phrase_kernel(%arg0: memref<2x8x32xf32, #tpu.memory_space<vmem>>, %arg1: memref<32x384xbf16, #tpu.memory_space<vmem>>, %arg2: memref<1x64xf32, #tpu.memory_space<vmem>>, %arg3: memref<1x64xf32, #tpu.memory_space<vmem>>, %arg4: memref<1x64xf32, #tpu.memory_space<vmem>>, %arg5: memref<2x8x32xf32, #tpu.memory_space<vmem>>, %arg6: memref<2x8x64xf32, #tpu.memory_space<vmem>>) attributes {dimension_semantics = [], scalar_prefetch = 0 : i64, scratch_operands = 0 : i64, tpu.core_type = #tpu.core_type<tc>} {
    %c0 = arith.constant 0 : index
    %c0_0 = arith.constant 0 : index
    %c0_1 = arith.constant 0 : index
    %0 = vector.load %arg0[%c0, %c0_0, %c0_1] : memref<2x8x32xf32, #tpu.memory_space<vmem>>, vector<2x8x32xf32>
    %1 = math.tanh %0 : vector<2x8x32xf32>
    %c0_2 = arith.constant 0 : index
    %c0_3 = arith.constant 0 : index
    %c0_4 = arith.constant 0 : index
    %2 = vector.load %arg5[%c0_2, %c0_3, %c0_4] : memref<2x8x32xf32, #tpu.memory_space<vmem>>, vector<2x8x32xf32>
    tpu.vector_store %arg5[%c0_2, %c0_3, %c0_4], %1 {strides = array<i32>} : memref<2x8x32xf32, #tpu.memory_space<vmem>>, vector<2x8x32xf32>,
    %3 = vector.shape_cast %1 : vector<2x8x32xf32> to vector<16x32xf32>
    %4 = arith.truncf %3 : vector<16x32xf32> to vector<16x32xbf16>
    %c0_5 = arith.constant 0 : index
    %c0_6 = arith.constant 0 : index
    %5 = vector.load %arg1[%c0_5, %c0_6] : memref<32x384xbf16, #tpu.memory_space<vmem>>, vector<32x384xbf16>
    %cst = arith.constant dense<0.000000e+00> : vector<16x384xf32>
    %6 = tpu.matmul %4, %5, %cst {dimension_numbers = #tpu.dot_dimension_numbers<[1], [0], [0], [1], [0, 0, 1, 1], [], []>} : vector<16x32xbf16>, vector<32x384xbf16>, vector<16x384xf32> -> vector<16x384xf32>
    %7 = vector.shape_cast %6 : vector<16x384xf32> to vector<2x8x384xf32>
    %8 = vector.extract_strided_slice %7 {offsets = [0, 0, 0], sizes = [2, 8, 64], strides = [1, 1, 1]} : vector<2x8x384xf32> to vector<2x8x64xf32>
    %c0_7 = arith.constant 0 : index
    %c0_8 = arith.constant 0 : index
    %9 = vector.load %arg2[%c0_7, %c0_8] : memref<1x64xf32, #tpu.memory_space<vmem>>, vector<1x64xf32>
    %10 = vector.shape_cast %9 : vector<1x64xf32> to vector<1x1x64xf32>
    %11 = vector.broadcast %10 : vector<1x1x64xf32> to vector<2x8x64xf32>
    %12 = arith.addf %8, %11 : vector<2x8x64xf32>
    %13 = vector.extract_strided_slice %7 {offsets = [0, 0, 64], sizes = [2, 8, 64], strides = [1, 1, 1]} : vector<2x8x384xf32> to vector<2x8x64xf32>
    %cst_9 = arith.constant 0.000000e+00 : f32
    %14 = vector.broadcast %cst_9 : f32 to vector<2x1x64xf32>
    %15 = vector.extract_strided_slice %13 {offsets = [0, 0, 0], sizes = [2, 7, 64], strides = [1, 1, 1]} : vector<2x8x64xf32> to vector<2x7x64xf32>
    %16 = tpu.concatenate %14, %15 in 1 : vector<2x1x64xf32>, vector<2x7x64xf32> -> vector<2x8x64xf32>
    %17 = vector.extract_strided_slice %7 {offsets = [0, 0, 128], sizes = [2, 8, 64], strides = [1, 1, 1]} : vector<2x8x384xf32> to vector<2x8x64xf32>
    %18 = vector.extract_strided_slice %17 {offsets = [0, 1, 0], sizes = [2, 7, 64], strides = [1, 1, 1]} : vector<2x8x64xf32> to vector<2x7x64xf32>
    %cst_10 = arith.constant 0.000000e+00 : f32
    %19 = vector.broadcast %cst_10 : f32 to vector<2x1x64xf32>
    %20 = tpu.concatenate %18, %19 in 1 : vector<2x7x64xf32>, vector<2x1x64xf32> -> vector<2x8x64xf32>
    %21 = arith.addf %16, %20 : vector<2x8x64xf32>
    %c0_11 = arith.constant 0 : index
    %c0_12 = arith.constant 0 : index
    %22 = vector.load %arg3[%c0_11, %c0_12] : memref<1x64xf32, #tpu.memory_space<vmem>>, vector<1x64xf32>
    %23 = vector.shape_cast %22 : vector<1x64xf32> to vector<1x1x64xf32>
    %24 = vector.broadcast %23 : vector<1x1x64xf32> to vector<2x8x64xf32>
    %25 = arith.addf %21, %24 : vector<2x8x64xf32>
    %26 = vector.extract_strided_slice %7 {offsets = [0, 0, 192], sizes = [2, 8, 64], strides = [1, 1, 1]} : vector<2x8x384xf32> to vector<2x8x64xf32>
    %cst_13 = arith.constant 0.000000e+00 : f32
    %27 = vector.broadcast %cst_13 : f32 to vector<2x2x64xf32>
    %28 = vector.extract_strided_slice %26 {offsets = [0, 0, 0], sizes = [2, 6, 64], strides = [1, 1, 1]} : vector<2x8x64xf32> to vector<2x6x64xf32>
    %29 = tpu.concatenate %27, %28 in 1 : vector<2x2x64xf32>, vector<2x6x64xf32> -> vector<2x8x64xf32>
    %30 = vector.extract_strided_slice %7 {offsets = [0, 0, 256], sizes = [2, 8, 64], strides = [1, 1, 1]} : vector<2x8x384xf32> to vector<2x8x64xf32>
    %31 = arith.addf %29, %30 : vector<2x8x64xf32>
    %32 = vector.extract_strided_slice %7 {offsets = [0, 0, 320], sizes = [2, 8, 64], strides = [1, 1, 1]} : vector<2x8x384xf32> to vector<2x8x64xf32>
    %33 = vector.extract_strided_slice %32 {offsets = [0, 2, 0], sizes = [2, 6, 64], strides = [1, 1, 1]} : vector<2x8x64xf32> to vector<2x6x64xf32>
    %cst_14 = arith.constant 0.000000e+00 : f32
    %34 = vector.broadcast %cst_14 : f32 to vector<2x2x64xf32>
    %35 = tpu.concatenate %33, %34 in 1 : vector<2x6x64xf32>, vector<2x2x64xf32> -> vector<2x8x64xf32>
    %36 = arith.addf %31, %35 : vector<2x8x64xf32>
    %c0_15 = arith.constant 0 : index
    %c0_16 = arith.constant 0 : index
    %37 = vector.load %arg4[%c0_15, %c0_16] : memref<1x64xf32, #tpu.memory_space<vmem>>, vector<1x64xf32>
    %38 = vector.shape_cast %37 : vector<1x64xf32> to vector<1x1x64xf32>
    %39 = vector.broadcast %38 : vector<1x1x64xf32> to vector<2x8x64xf32>
    %40 = arith.addf %36, %39 : vector<2x8x64xf32>
    %41 = arith.maximumf %12, %25 : vector<2x8x64xf32>
    %42 = arith.maximumf %41, %40 : vector<2x8x64xf32>
    %c0_17 = arith.constant 0 : index
    %c0_18 = arith.constant 0 : index
    %c0_19 = arith.constant 0 : index
    %43 = vector.load %arg6[%c0_17, %c0_18, %c0_19] : memref<2x8x64xf32, #tpu.memory_space<vmem>>, vector<2x8x64xf32>
    tpu.vector_store %arg6[%c0_17, %c0_18, %c0_19], %42 {strides = array<i32>} : memref<2x8x64xf32, #tpu.memory_space<vmem>>, vector<2x8x64xf32>,
    return
  }
}

</mosaic_0001>

<bundles_post_ra>
// kernel: tpu_custom_call.1
= control target key start
LH: loop header
LB: loop body
LE: loop exit
PB: predicated region body
PF: predicated region fallthrough
CT: control target
= control target key end

     0   :  { %12 = vsyncpa [#allocation3], 0  ;;  %s575_s0 = inlined_call_operand.hbm [shape: f32[2,8,32], index: 0, kind: input, shape index: {}]   ;;  %s576_s1 = inlined_call_operand.hbm [shape: bf16[32,384], index: 1, kind: input, shape index: {}]   ;;  %s577_s2 = inlined_call_operand.vmem [shape: f32[1,64], index: 2, kind: input, shape index: {}]   ;;  %s578_s3 = inlined_call_operand.vmem [shape: f32[1,64], index: 3, kind: input, shape index: {}]   ;;  %s579_s4 = inlined_call_operand.vmem [shape: f32[1,64], index: 4, kind: input, shape index: {}]   ;;  %s580_s5 = inlined_call_operand.hbm [shape: f32[2,8,32], index: 5, kind: output, shape index: {0}]   ;;  %s581_s6 = inlined_call_operand.hbm [shape: f32[2,8,64], index: 6, kind: output, shape index: {1}]  }
   0x1   :  { %13 = vsyncpa [#allocation6], 0 }
   0x2   :  { %14 = vsyncpa [#allocation4], 0 }
   0x3   :  { %15 = vsyncpa [#allocation9], 0  ;;  %s454_s21 = smov [#allocation2]   ;;  %s358_s25 = scalar_lea.hbm %s575_s0, 256 }
   0x4   :  { %s21_s22 = sshll.u32 %s454_s21, 4  ;;  %p359_p0 = scmp.ne.s32.totalorder %s575_s0, %s358_s25  ;;  %s22_s22 = int_to_ptr.vmem [resolvable:$true] %s21_s22 }
   0x5   :  { %p362_p1 = scmp.lt.u32.totalorder %s358_s25, %s575_s0 }
   0x7   :  { %p364_p2 = pnand %p362_p1, %p359_p0 }
   0x9   :  { %367 = shalt.err (!%p364_p2)
}
   0xa   :  { %s368_s30 = scalar_lea.vmem %s22_s22, 256  ;;  %p373_p4 = scmp.lt.s32.totalorder %s22_s22, %s22_s22 }
   0xb   :  { %p369_p3 = scmp.ne.s32.totalorder %s22_s22, %s368_s30  ;;  %p374_p5 = scmp.lt.s32.totalorder %s368_s30, %s368_s30 }
   0xd   :  { %p375_p6 = por %p374_p5, %p373_p4 }
   0xf   :  { %p376_p7 = pnand %p375_p6, %p369_p3 }
  0x11   :  { %379 = shalt.err (!%p376_p7)
}
  0x12   :  { %s455_s7 = smov 128   ;;  %s456_s8 = smov 8  }
  0x13   :  { %27 = dma.hbm_to_vmem [thread:$0]  %s575_s0, 256, %s22_s22, [#allocation3], %s455_s7, %s455_s7, %s456_s8  }
  0x14   :  { %s457_s11 = smov [#allocation5]   ;;  %s380_s15 = scalar_lea.hbm %s576_s1, 768 }
  0x15   :  { %s33_s12 = sshll.u32 %s457_s11, 4  ;;  %p381_p8 = scmp.ne.s32.totalorder %s576_s1, %s380_s15  ;;  %s34_s12 = int_to_ptr.vmem [resolvable:$true] %s33_s12 }
  0x16   :  { %p384_p9 = scmp.lt.u32.totalorder %s380_s15, %s576_s1 }
  0x18   :  { %p386_p10 = pnand %p384_p9, %p381_p8 }
  0x1a   :  { %389 = shalt.err (!%p386_p10)
}
  0x1b   :  { %s390_s20 = scalar_lea.vmem %s34_s12, 768  ;;  %p395_p12 = scmp.lt.s32.totalorder %s34_s12, %s34_s12 }
  0x1c   :  { %p391_p11 = scmp.ne.s32.totalorder %s34_s12, %s390_s20  ;;  %p396_p13 = scmp.lt.s32.totalorder %s390_s20, %s390_s20 }
  0x1e   :  { %p397_p0 = por %p396_p13, %p395_p12 }
  0x20   :  { %p398_p1 = pnand %p397_p0, %p391_p11 }
  0x22   :  { %401 = shalt.err (!%p398_p1)
}
  0x23   :  { %s458_s0 = smov 192   ;;  %s459_s21 = smov 12  }
  0x24   :  { %39 = dma.hbm_to_vmem [thread:$0]  %s576_s1, 768, %s34_s12, [#allocation6], %s458_s0, %s458_s0, %s459_s21  }
  0x25   :  { %446 = dma.done.wait [#allocation3], 256  }
  0x26   :  { %447 = vsyncadd [#allocation3], 4294967040 }
  0x27   :  { %448 = dma.done.wait [#allocation6], 768  }
  0x28   :  { %449 = vsyncadd [#allocation6], 4294966528  ;;  %v460_v0 = vmov 0.0   ;;  %v461_v1 = vmov 0   ;;  %vm462_vm0 = vmmov 0   ;;  %v53_v7 = vld [vmem:[#allocation2] sm:$0xff] }
  0x29   :  { %326 = vmatprep.subr.bf16.mxu1 %v460_v0  ;;  %136 = vmatprep.mubr.bf16.mxu0 %v461_v1  ;;  %v346_v2 = vld [vmem:[#allocation5 + $0x4] ss:$12 sps:$4 sm:$0xff]   ;;  %v348_v3 = vld [vmem:[#allocation5] ss:$12 sps:$4 sm:$0xff]   ;;  %v349_v4 = vld [vmem:[#allocation5 + $0x1c] ss:$12 sps:$4 sm:$0xff]   ;;  %354 = vtanh.f32 %v53_v7 }
  0x2a   :  { %330 = vmatprep.mubr.msk.bf16.mxu1 %vm462_vm0, %v460_v0  ;;  %104 = vmatprep.subr.bf16.mxu0 %v346_v2  ;;  %v351_v5 = vld [vmem:[#allocation5 + $0x8] ss:$12 sps:$4 sm:$0xff]   ;;  %v352_v6 = vld [vmem:[#allocation5 + $0x18] ss:$12 sps:$4 sm:$0xff]   ;;  %v353_v9 = vld [vmem:[#allocation5 + $0x20] ss:$12 sps:$4 sm:$0xff]  }
  0x2b   :  { %105 = vmatpush1.bf16.msra.mxu0 %v348_v3  ;;  %v54_v8 = vld [vmem:[#allocation2 + $0x8] sm:$0xff]  ;;  %327 = vmatpush3.bf16.msra.mxu1 %v351_v5  ;;  %vm57_vm1 = vcmask 261120   ;;  %s463_s1 = smov 64   ;;  %s464_s24 = smov [#allocation7]   ;;  %vm249_vm2 = vcmask 1045504  }
  0x2c   :  { %106 = vmatprep.subr.bf16.mxu0 %v349_v4  ;;  %356 = vtanh.f32 %v54_v8  ;;  %328 = vmatprep.subr.bf16.mxu1 %v460_v0  ;;  %s283_s25 = sshll.u32 %s464_s24, 4  ;;  %s284_s25 = int_to_ptr.vmem [resolvable:$true] %s283_s25 }
  0x2d   :  { %s402_s26 = scalar_lea.vmem %s284_s25, 256  ;;  %p407_p3 = scmp.lt.s32.totalorder %s284_s25, %s284_s25 }
  0x2e   :  { %p403_p2 = scmp.ne.s32.totalorder %s284_s25, %s402_s26  ;;  %p408_p4 = scmp.lt.s32.totalorder %s402_s26, %s402_s26 }
  0x2f   :  { %107 = vmatpush1.bf16.msra.mxu0 %v352_v6  ;;  %329 = vmatpush3.bf16.msra.mxu1 %v353_v9 }
  0x30   :  { %p409_p5 = por %p408_p4, %p407_p3 }
  0x32   :  { %p410_p6 = pnand %p409_p5, %p403_p2 }
  0x33   :  { %v355_v10 = vpop.eup %354 }
  0x34   :  { %58 = vst.msk [vmem:[#allocation7] sm:$0xff] %vm57_vm1, %v355_v10 }
  0x36   :  { %v357_v11 = vpop.eup %356 }
  0x37   :  { %v60_v12 = vpack.c.bf16 %v357_v11, %v355_v10  ;;  %59 = vst.msk [vmem:[#allocation7 + $0x8] sm:$0xff] %vm57_vm1, %v357_v11 }
  0x39   :  { %318 = vmatmul.mubr.msk.bf16.vlgmr.msra.gmra.mrb[0].mxu0 %vm57_vm1, %v60_v12  ;;  %331 = vmatmul.mubr.msk.bf16.vlgmr.msra.gmra.mrb[0].mxu1 %vm57_vm1, %v60_v12 }
 0x10c   :  { %v138_v13 = vpop.f32.mrb[0].mxu0  ;;  %v181_v14 = vpop.f32.mrb[0].mxu1 }
 0x10d   :  { %v140_v15 = vpop.f32.mrb[1].mxu0  ;;  %v199_v16 = vrot.slane %v138_v13, 7  ;;  %v332_v17 = vpop.f32.mrb[1].mxu1  ;;  %v245_v23 = vrot.slane %v181_v14, 2 }
 0x10e   :  { %v142_v18 = vpop.f32.mrb[2].mxu0  ;;  %v230_v19 = vrot.slane %v140_v15, 6  ;;  %v184_v20 = vpop.f32.mrb[2].mxu1 }
 0x10f   :  { %201 = vrot.lane.b32.xlu0 %v199_v16, %s463_s1  ;;  %v144_v21 = vpop.f32.mrb[3].mxu0  ;;  %v333_v22 = vpop.f32.mrb[3].mxu1  ;;  %v200_v24 = vrot.slane %v142_v18, 7 }
 0x110   :  { %232 = vrot.lane.b32.xlu1 %v230_v19, %s463_s1  ;;  %v231_v25 = vrot.slane %v144_v21, 6 }
 0x111   :  { %413 = shalt.err (!%p410_p6)
}
 0x112   :  { %s414_s29 = scalar_lea.hbm %s580_s5, 256 }
 0x113   :  { %p415_p7 = scmp.ne.s32.totalorder %s580_s5, %s414_s29  ;;  %p418_p8 = scmp.lt.u32.totalorder %s414_s29, %s580_s5 }
 0x115   :  { %p420_p9 = pnand %p418_p8, %p415_p7 }
 0x117   :  { %423 = shalt.err (!%p420_p9)
}
 0x118   :  { %289 = dma.vmem_to_hbm [thread:$0]  %s284_s25, 256, %s580_s5, [#allocation4], %s455_s7, %s455_s7, %s456_s8   ;;  %v246_v26 = vrot.slane %v184_v20, 2  ;;  %v250_v27 = vsel %vm249_vm2, %v245_v23, 0.0  ;;  %v212_v29 = vrot.slane %v140_v15, 1  ;;  %vm207_vm3 = vcmask 1040384  }
 0x119   :  { %203 = vrot.lane.b32.xlu0 %v200_v24, %s463_s1  ;;  %234 = vrot.lane.b32.xlu1 %v231_v25, %s463_s1  ;;  %vm216_vm4 = vcmask 1046528   ;;  %v320_v30 = vld [vmem:[%s577_s2] ss:$0 sm:$0xff]  ;;  %v213_v32 = vrot.slane %v144_v21, 1  ;;  %vm238_vm5 = vcmask 1041408   ;;  %s465_s17 = smov [#allocation8]  }
 0x11a   :  { %v251_v28 = vsel %vm249_vm2, %v246_v26, 0.0  ;;  %v321_v33 = vld [vmem:[%s578_s3] ss:$0 sm:$0xff]  ;;  %v217_v35 = vsel %vm216_vm4, %v212_v29, 0.0  ;;  %v195_v38 = vadd.f32 %v320_v30, %v138_v13  ;;  %v196_v50 = vadd.f32 %v320_v30, %v142_v18  ;;  %s295_s18 = sshll.u32 %s465_s17, 4  ;;  %s296_s18 = int_to_ptr.vmem [resolvable:$true] %s295_s18 }
 0x11b   :  { %v218_v43 = vsel %vm216_vm4, %v213_v32, 0.0  ;;  %v322_v52 = vld [vmem:[%s579_s4] ss:$0 sm:$0xff]  ;;  %vm275_vm6 = vcmask 523264   ;;  %s424_s19 = scalar_lea.vmem %s296_s18, 256  ;;  %p429_p11 = scmp.lt.s32.totalorder %s296_s18, %s296_s18 }
 0x11c   :  { %p425_p10 = scmp.ne.s32.totalorder %s296_s18, %s424_s19  ;;  %p430_p12 = scmp.lt.s32.totalorder %s424_s19, %s424_s19 }
 0x11d   :  { %254 = vrot.lane.b32.xlu0 %v250_v27, %s463_s1  ;;  %256 = vrot.lane.b32.xlu1 %v251_v28, %s463_s1 }
 0x11e   :  { %p431_p13 = por %p430_p12, %p429_p11 }
 0x120   :  { %p432_p0 = pnand %p431_p13, %p425_p10 }
 0x181   :  { %v202_v31 = vpop.permute.xlu0 %201 }
 0x182   :  { %v208_v34 = vsel %vm207_vm3, 0.0, %v202_v31  ;;  %v233_v36 = vpop.permute.xlu1 %232 }
 0x183   :  { %v219_v37 = vadd.f32 %v217_v35, %v208_v34  ;;  %v239_v40 = vsel %vm238_vm5, 0.0, %v233_v36 }
 0x184   :  { %v241_v48 = vadd.f32 %v239_v40, %v181_v14 }
 0x185   :  { %v228_v39 = vadd.f32 %v321_v33, %v219_v37 }
 0x187   :  { %v271_v45 = vmax.f32 %v195_v38, %v228_v39 }
 0x18b   :  { %v204_v41 = vpop.permute.xlu0 %203  ;;  %v235_v44 = vpop.permute.xlu1 %234 }
 0x18c   :  { %v209_v42 = vsel %vm207_vm3, 0.0, %v204_v41  ;;  %v240_v47 = vsel %vm238_vm5, 0.0, %v235_v44 }
 0x18d   :  { %v220_v46 = vadd.f32 %v218_v43, %v209_v42  ;;  %v242_v49 = vadd.f32 %v240_v47, %v184_v20 }
 0x18f   :  { %v229_v51 = vadd.f32 %v321_v33, %v220_v46  ;;  %v255_v53 = vpop.permute.xlu0 %254  ;;  %v257_v55 = vpop.permute.xlu1 %256 }
 0x190   :  { %v260_v54 = vadd.f32 %v255_v53, %v241_v48  ;;  %v261_v57 = vadd.f32 %v257_v55, %v242_v49 }
 0x191   :  { %v272_v56 = vmax.f32 %v196_v50, %v229_v51 }
 0x192   :  { %v269_v58 = vadd.f32 %v322_v52, %v260_v54  ;;  %v270_v59 = vadd.f32 %v322_v52, %v261_v57 }
 0x194   :  { %v273_v60 = vmax.f32 %v271_v45, %v269_v58  ;;  %v274_v61 = vmax.f32 %v272_v56, %v270_v59 }
 0x196   :  { %276 = vst.msk [vmem:[#allocation8] sm:$0xff] %vm275_vm6, %v273_v60  ;;  %277 = vst.msk [vmem:[#allocation8 + $0x8] sm:$0xff] %vm275_vm6, %v274_v61 }
 0x197   :  { %435 = shalt.err (!%p432_p0)
}
 0x198   :  { %s436_s0 = scalar_lea.hbm %s581_s6, 256 }
 0x199   :  { %p437_p1 = scmp.ne.s32.totalorder %s581_s6, %s436_s0  ;;  %p440_p2 = scmp.lt.u32.totalorder %s436_s0, %s581_s6 }
 0x19b   :  { %p442_p3 = pnand %p440_p2, %p437_p1 }
 0x19d   :  { %445 = shalt.err (!%p442_p3)
}
 0x19e   :  { %301 = dma.vmem_to_hbm [thread:$0]  %s296_s18, 256, %s581_s6, [#allocation9], %s455_s7, %s455_s7, %s456_s8  }
 0x19f   :  { %450 = dma.done.wait [#allocation4], 256  }
 0x1a0   :  { %451 = vsyncadd [#allocation4], 4294967040 }
 0x1a1   :  { %452 = dma.done.wait [#allocation9], 256  }
 0x1a2   :  { %453 = vsyncadd [#allocation9], 4294967040 }
 0x1a3   :  { %308 = vsyncpa [#allocation3], 1 }
 0x1a4   :  { %309 = vsyncpa [#allocation6], 1 }
 0x1a5   :  { %310 = vsyncpa [#allocation4], 1 }
 0x1a6   :  { %311 = vsyncpa [#allocation9], 1 }

</bundles_post_ra>
